<compile_context>
chip_gen: v5e
topology: v5e:2x2
jax: 0.10.0
libtpu: 0.0.40
codegen_flags: <defaults>
</compile_context>

<pallas_src>
import jax
import jax.numpy as jnp
from jax.experimental import pallas as pl
from jax.experimental.pallas import tpu as pltpu

LANE = 128            # vreg lane width: last dim of every block
ROW_ALIGN = 32        # lcm of f32(8) / bf16(16) / int8(32) sublane packing
SUBLANES = 8          # f32 vreg sublanes
NUM_SUMS = 4          # [n_pos, n_unl, sum(s*pos), sum(s*unl)]
ACC_ROWS = NUM_SUMS * SUBLANES   # per-core accumulator block rows (32)


def _pu_partial_sums_kernel(x_ref, t_ref, acc_ref):
    """Accumulate per-lane partial sums for one (tile_rows, 128) tile.

    acc_ref is the per-core (32, 128) f32 output block; it stays resident
    across the inner ("arbitrary") grid axis and is used as the accumulator.
    Rows [8q, 8q+8) hold quantity q:
      q=0: sum(positive)          q=1: sum(unlabeled)
      q=2: sum(sigmoid(-x)*pos)   q=3: sum(sigmoid(-x)*unl)
    """
    @pl.when(pl.program_id(1) == 0)
    def _init():
        acc_ref[...] = jnp.zeros_like(acc_ref)

    x = x_ref[...].astype(jnp.float32)
    t = t_ref[...].astype(jnp.float32)

    # Padded elements carry t == -1: neither positive (1) nor unlabeled (0),
    # so they contribute nothing (the torch module also ignores such labels).
    positive = (t == 1.0).astype(jnp.float32)
    unlabeled = (t == 0.0).astype(jnp.float32)

    # loss_func(v) = sigmoid(-v) = 0.5 - 0.5*tanh(0.5*v): one EUP op per vreg.
    # sigmoid(v) = 1 - sigmoid(-v) is recovered algebraically at finalize time.
    s = 0.5 - 0.5 * jnp.tanh(0.5 * x)

    def fold8(v):
        # (tile_rows, 128) -> (8, 128); reshape aligns with the (8,128) vreg
        # tiling, so this is pure elementwise vreg adds (no XLU).
        return jnp.sum(v.reshape(-1, SUBLANES, LANE), axis=0)

    acc_ref[0 * SUBLANES:1 * SUBLANES, :] += fold8(positive)
    acc_ref[1 * SUBLANES:2 * SUBLANES, :] += fold8(unlabeled)
    acc_ref[2 * SUBLANES:3 * SUBLANES, :] += fold8(s * positive)
    acc_ref[3 * SUBLANES:4 * SUBLANES, :] += fold8(s * unlabeled)


def pu_loss(inp, target, *, prior, gamma=1.0, beta=0.0, nnPU=True,
            block_rows=4096, n_cores=2):
    """Pallas TPU implementation of PULoss.forward(inp, target)."""
    assert inp.shape == target.shape
    prior = float(prior)
    if not 0.0 < prior < 1.0:
        raise TypeError("The class prior should be in (0, 1)")
    gamma = float(gamma)
    beta = float(beta)

    n = int(inp.size)

    # ---- dtype policy: stream near-native dtypes, cast to f32 in-kernel ----
    x_flat = inp.reshape(-1)
    if x_flat.dtype.name not in ("float32", "bfloat16"):
        x_flat = x_flat.astype(jnp.float32)

    t_flat = target.reshape(-1)
    if t_flat.dtype.name == "bool" or jnp.issubdtype(t_flat.dtype, jnp.integer):
        t_flat = t_flat.astype(jnp.int8)      # PU labels fit in int8: 1 B/elem
    elif t_flat.dtype.name not in ("float32", "bfloat16"):
        t_flat = t_flat.astype(jnp.float32)

    # ---- tiling plan (static Python ints) ----
    rows = max(1, pl.cdiv(n, LANE))
    n_cores = max(1, min(int(n_cores), rows // ROW_ALIGN))   # don't split tiny N
    total_tiles = max(n_cores, pl.cdiv(rows, max(int(block_rows), ROW_ALIGN)))
    total_tiles = pl.cdiv(total_tiles, n_cores) * n_cores     # multiple of cores
    tile_rows = pl.cdiv(pl.cdiv(rows, total_tiles), ROW_ALIGN) * ROW_ALIGN
    rows_padded = total_tiles * tile_rows
    inner = total_tiles // n_cores

    # ---- padding: x -> 0, t -> -1 (neither class) => no in-kernel masking ----
    pad = rows_padded * LANE - n
    if pad:
        x_flat = jnp.pad(x_flat, (0, pad))
        t_flat = jnp.pad(t_flat, (0, pad), constant_values=-1)
    x2 = x_flat.reshape(rows_padded, LANE)
    t2 = t_flat.reshape(rows_padded, LANE)

    parts = pl.pallas_call(
        _pu_partial_sums_kernel,
        out_shape=jax.ShapeDtypeStruct((n_cores, ACC_ROWS, LANE), jnp.float32),
        grid=(n_cores, inner),
        in_specs=[
            pl.BlockSpec((tile_rows, LANE), lambda c, i: (c * inner + i, 0)),
            pl.BlockSpec((tile_rows, LANE), lambda c, i: (c * inner + i, 0)),
        ],
        out_specs=pl.BlockSpec((None, ACC_ROWS, LANE), lambda c, i: (c, 0, 0)),
        compiler_params=pltpu.CompilerParams(
            dimension_semantics=("parallel", "arbitrary")),
    )(x2, t2)

    # ---- finalize (tiny): lane/core reduction + risk / nnPU scalar math ----
    sums = jnp.sum(parts.reshape(n_cores, NUM_SUMS, SUBLANES, LANE),
                   axis=(0, 2, 3))                       # (4,)
    n_pos_raw, n_unl_raw = sums[0], sums[1]
    sum_s_pos, sum_s_unl = sums[2], sums[3]              # sigmoid(-x)-weighted

    sum_sig_pos = n_pos_raw - sum_s_pos                  # sum(sigmoid(x)*pos)
    sum_sig_unl = n_unl_raw - sum_s_unl                  # sum(sigmoid(x)*unl)

    n_pos = jnp.maximum(n_pos_raw, 1.0)                  # min_count = 1
    n_unl = jnp.maximum(n_unl_raw, 1.0)

    positive_risk = prior * sum_s_pos / n_pos
    negative_risk = -prior * sum_sig_pos / n_pos + sum_sig_unl / n_unl

    if nnPU:
        return jnp.where(negative_risk < -beta,
                         -gamma * negative_risk,
                         positive_risk + negative_risk)
    return positive_risk + negative_risk


def _pu_loss_ref(inp, target, *, prior, gamma=1.0, beta=0.0, nnPU=True):
    """Pure-JAX reference mirroring the PyTorch module."""
    inp = inp.astype(jnp.float32)
    target = target.astype(jnp.float32)
    positive = (target == 1.0).astype(jnp.float32)
    unlabeled = (target == 0.0).astype(jnp.float32)
    n_pos = jnp.maximum(jnp.sum(positive), 1.0)
    n_unl = jnp.maximum(jnp.sum(unlabeled), 1.0)
    y_positive = jax.nn.sigmoid(-inp) * positive
    y_positive_inv = jax.nn.sigmoid(inp) * positive
    y_unlabeled = jax.nn.sigmoid(inp) * unlabeled
    positive_risk = prior * jnp.sum(y_positive) / n_pos
    negative_risk = (-prior * jnp.sum(y_positive_inv) / n_pos
                     + jnp.sum(y_unlabeled) / n_unl)
    if nnPU:
        return jnp.where(negative_risk < -beta,
                         -gamma * negative_risk,
                         positive_risk + negative_risk)
    return positive_risk + negative_risk


if __name__ == "__main__":
    key = jax.random.PRNGKey(0)
    prior = 0.3
    k1, k2, k3, k4, k5, k6 = jax.random.split(key, 6)

    # Case 1: tiny ragged 1-D batch (N % 128 != 0), float {0,1} targets,
    # single tile / single core.
    n1 = 300
    inp1 = jax.random.normal(k1, (n1,), dtype=jnp.float32)
    tgt1 = jax.random.bernoulli(k2, 0.3, (n1,)).astype(jnp.float32)
    out1 = jax.block_until_ready(pu_loss(inp1, tgt1, prior=prior))
    ref1 = _pu_loss_ref(inp1, tgt1, prior=prior)
    assert jnp.allclose(out1, ref1, rtol=1e-3, atol=1e-5), (out1, ref1)

    # Case 2: bf16 inputs + integer {-1,0,1} labels (int8 fast path), forcing a
    # multi-step streamed reduction on both grid axes (2 cores x 2 inner tiles)
    # with row padding exercised.
    n2 = 30000
    inp2 = jax.random.normal(k3, (n2,), dtype=jnp.bfloat16)
    tgt2 = jax.random.randint(k4, (n2,), -1, 2)
    out2 = jax.block_until_ready(
        pu_loss(inp2, tgt2, prior=prior, block_rows=64, n_cores=2))
    ref2 = _pu_loss_ref(inp2, tgt2, prior=prior)
    assert jnp.allclose(out2, ref2, rtol=1e-3, atol=1e-5), (out2, ref2)

    # Case 3: small 2-D batch with labels outside {0,1} (ignored by the loss),
    # nnPU branch disabled.
    inp3 = jax.random.normal(k5, (16, 33), dtype=jnp.float32)
    tgt3 = jax.random.randint(k6, (16, 33), 0, 3).astype(jnp.float32)
    out3 = jax.block_until_ready(pu_loss(inp3, tgt3, prior=0.6, nnPU=False))
    ref3 = _pu_loss_ref(inp3, tgt3, prior=0.6, nnPU=False)
    assert jnp.allclose(out3, ref3, rtol=1e-3, atol=1e-5), (out3, ref3)

    print("KERNEL_OK")
</pallas_src>

<mosaic_0001>
module attributes {stable_mosaic.version = 11 : i64} {
  func.func @_pu_partial_sums_kernel(%arg0: i32, %arg1: i32, %arg2: memref<32x128xf32, #tpu.memory_space<vmem>>, %arg3: memref<32x128xf32, #tpu.memory_space<vmem>>, %arg4: memref<1x32x128xf32, #tpu.memory_space<vmem>>) attributes {dimension_semantics = [#tpu.dimension_semantics<parallel>, #tpu.dimension_semantics<arbitrary>], iteration_bounds = array<i64: 1, 1>, scalar_prefetch = 0 : i64, scratch_operands = 0 : i64, tpu.core_type = #tpu.core_type<tc>, window_params = [{transform_indices = @transform_0, window_bounds = array<i64: 32, 128>}, {transform_indices = @transform_1, window_bounds = array<i64: 32, 128>}, {transform_indices = @transform_2, window_bounds = array<i64: 1, 32, 128>}]} {
    %c0_i32 = arith.constant 0 : i32
    %0 = arith.cmpi eq, %arg1, %c0_i32 : i32
    %1 = arith.extui %0 : i1 to i32
    %c0_i32_0 = arith.constant 0 : i32
    %2 = arith.cmpi ne, %1, %c0_i32_0 : i32
    scf.if %2 {
      %cst_33 = arith.constant 0.000000e+00 : f32
      %54 = vector.broadcast %cst_33 : f32 to vector<32x128xf32>
      %c0_34 = arith.constant 0 : index
      %c0_35 = arith.constant 0 : index
      %c0_36 = arith.constant 0 : index
      %55 = vector.load %arg4[%c0_34, %c0_35, %c0_36] : memref<1x32x128xf32, #tpu.memory_space<vmem>>, vector<1x32x128xf32>
      %56 = vector.shape_cast %55 : vector<1x32x128xf32> to vector<32x128xf32>
      %57 = vector.shape_cast %54 : vector<32x128xf32> to vector<1x32x128xf32>
      tpu.vector_store %arg4[%c0_34, %c0_35, %c0_36], %57 {strides = array<i32>} : memref<1x32x128xf32, #tpu.memory_space<vmem>>, vector<1x32x128xf32>,
    } else {
    }
    %c0 = arith.constant 0 : index
    %c0_1 = arith.constant 0 : index
    %3 = vector.load %arg2[%c0, %c0_1] : memref<32x128xf32, #tpu.memory_space<vmem>>, vector<32x128xf32>
    %c0_2 = arith.constant 0 : index
    %c0_3 = arith.constant 0 : index
    %4 = vector.load %arg3[%c0_2, %c0_3] : memref<32x128xf32, #tpu.memory_space<vmem>>, vector<32x128xf32>
    %cst = arith.constant 1.000000e+00 : f32
    %5 = vector.broadcast %cst : f32 to vector<32x128xf32>
    %6 = arith.cmpf oeq, %4, %5 : vector<32x128xf32>
    %7 = arith.extui %6 : vector<32x128xi1> to vector<32x128xi32>
    %8 = arith.sitofp %7 : vector<32x128xi32> to vector<32x128xf32>
    %cst_4 = arith.constant 0.000000e+00 : f32
    %9 = vector.broadcast %cst_4 : f32 to vector<32x128xf32>
    %10 = arith.cmpf oeq, %4, %9 : vector<32x128xf32>
    %11 = arith.extui %10 : vector<32x128xi1> to vector<32x128xi32>
    %12 = arith.sitofp %11 : vector<32x128xi32> to vector<32x128xf32>
    %cst_5 = arith.constant 5.000000e-01 : f32
    %13 = vector.broadcast %cst_5 : f32 to vector<32x128xf32>
    %14 = arith.mulf %13, %3 : vector<32x128xf32>
    %15 = math.tanh %14 : vector<32x128xf32>
    %cst_6 = arith.constant 5.000000e-01 : f32
    %16 = vector.broadcast %cst_6 : f32 to vector<32x128xf32>
    %17 = arith.mulf %16, %15 : vector<32x128xf32>
    %cst_7 = arith.constant 5.000000e-01 : f32
    %18 = vector.broadcast %cst_7 : f32 to vector<32x128xf32>
    %19 = arith.subf %18, %17 : vector<32x128xf32>
    %c0_8 = arith.constant 0 : index
    %c0_9 = arith.constant 0 : index
    %c0_10 = arith.constant 0 : index
    %20 = vector.load %arg4[%c0_8, %c0_9, %c0_10] : memref<1x32x128xf32, #tpu.memory_space<vmem>>, vector<1x8x128xf32>
    %21 = vector.shape_cast %20 : vector<1x8x128xf32> to vector<8x128xf32>
    %22 = vector.shape_cast %8 : vector<32x128xf32> to vector<4x8x128xf32>
    %cst_11 = arith.constant dense<0.000000e+00> : vector<8x128xf32>
    %23 = vector.multi_reduction <add>, %22, %cst_11 [0] : vector<4x8x128xf32> to vector<8x128xf32>
    %24 = arith.addf %21, %23 : vector<8x128xf32>
    %c0_12 = arith.constant 0 : index
    %c0_13 = arith.constant 0 : index
    %c0_14 = arith.constant 0 : index
    %25 = vector.load %arg4[%c0_12, %c0_13, %c0_14] : memref<1x32x128xf32, #tpu.memory_space<vmem>>, vector<1x8x128xf32>
    %26 = vector.shape_cast %25 : vector<1x8x128xf32> to vector<8x128xf32>
    %27 = vector.shape_cast %24 : vector<8x128xf32> to vector<1x8x128xf32>
    tpu.vector_store %arg4[%c0_12, %c0_13, %c0_14], %27 {strides = array<i32>} : memref<1x32x128xf32, #tpu.memory_space<vmem>>, vector<1x8x128xf32>,
    %c0_15 = arith.constant 0 : index
    %c8 = arith.constant 8 : index
    %c0_16 = arith.constant 0 : index
    %28 = vector.load %arg4[%c0_15, %c8, %c0_16] : memref<1x32x128xf32, #tpu.memory_space<vmem>>, vector<1x8x128xf32>
    %29 = vector.shape_cast %28 : vector<1x8x128xf32> to vector<8x128xf32>
    %30 = vector.shape_cast %12 : vector<32x128xf32> to vector<4x8x128xf32>
    %cst_17 = arith.constant dense<0.000000e+00> : vector<8x128xf32>
    %31 = vector.multi_reduction <add>, %30, %cst_17 [0] : vector<4x8x128xf32> to vector<8x128xf32>
    %32 = arith.addf %29, %31 : vector<8x128xf32>
    %c0_18 = arith.constant 0 : index
    %c8_19 = arith.constant 8 : index
    %c0_20 = arith.constant 0 : index
    %33 = vector.load %arg4[%c0_18, %c8_19, %c0_20] : memref<1x32x128xf32, #tpu.memory_space<vmem>>, vector<1x8x128xf32>
    %34 = vector.shape_cast %33 : vector<1x8x128xf32> to vector<8x128xf32>
    %35 = vector.shape_cast %32 : vector<8x128xf32> to vector<1x8x128xf32>
    tpu.vector_store %arg4[%c0_18, %c8_19, %c0_20], %35 {strides = array<i32>} : memref<1x32x128xf32, #tpu.memory_space<vmem>>, vector<1x8x128xf32>,
    %c0_21 = arith.constant 0 : index
    %c16 = arith.constant 16 : index
    %c0_22 = arith.constant 0 : index
    %36 = vector.load %arg4[%c0_21, %c16, %c0_22] : memref<1x32x128xf32, #tpu.memory_space<vmem>>, vector<1x8x128xf32>
    %37 = vector.shape_cast %36 : vector<1x8x128xf32> to vector<8x128xf32>
    %38 = arith.mulf %19, %8 : vector<32x128xf32>
    %39 = vector.shape_cast %38 : vector<32x128xf32> to vector<4x8x128xf32>
    %cst_23 = arith.constant dense<0.000000e+00> : vector<8x128xf32>
    %40 = vector.multi_reduction <add>, %39, %cst_23 [0] : vector<4x8x128xf32> to vector<8x128xf32>
    %41 = arith.addf %37, %40 : vector<8x128xf32>
    %c0_24 = arith.constant 0 : index
    %c16_25 = arith.constant 16 : index
    %c0_26 = arith.constant 0 : index
    %42 = vector.load %arg4[%c0_24, %c16_25, %c0_26] : memref<1x32x128xf32, #tpu.memory_space<vmem>>, vector<1x8x128xf32>
    %43 = vector.shape_cast %42 : vector<1x8x128xf32> to vector<8x128xf32>
    %44 = vector.shape_cast %41 : vector<8x128xf32> to vector<1x8x128xf32>
    tpu.vector_store %arg4[%c0_24, %c16_25, %c0_26], %44 {strides = array<i32>} : memref<1x32x128xf32, #tpu.memory_space<vmem>>, vector<1x8x128xf32>,
    %c0_27 = arith.constant 0 : index
    %c24 = arith.constant 24 : index
    %c0_28 = arith.constant 0 : index
    %45 = vector.load %arg4[%c0_27, %c24, %c0_28] : memref<1x32x128xf32, #tpu.memory_space<vmem>>, vector<1x8x128xf32>
    %46 = vector.shape_cast %45 : vector<1x8x128xf32> to vector<8x128xf32>
    %47 = arith.mulf %19, %12 : vector<32x128xf32>
    %48 = vector.shape_cast %47 : vector<32x128xf32> to vector<4x8x128xf32>
    %cst_29 = arith.constant dense<0.000000e+00> : vector<8x128xf32>
    %49 = vector.multi_reduction <add>, %48, %cst_29 [0] : vector<4x8x128xf32> to vector<8x128xf32>
    %50 = arith.addf %46, %49 : vector<8x128xf32>
    %c0_30 = arith.constant 0 : index
    %c24_31 = arith.constant 24 : index
    %c0_32 = arith.constant 0 : index
    %51 = vector.load %arg4[%c0_30, %c24_31, %c0_32] : memref<1x32x128xf32, #tpu.memory_space<vmem>>, vector<1x8x128xf32>
    %52 = vector.shape_cast %51 : vector<1x8x128xf32> to vector<8x128xf32>
    %53 = vector.shape_cast %50 : vector<8x128xf32> to vector<1x8x128xf32>
    tpu.vector_store %arg4[%c0_30, %c24_31, %c0_32], %53 {strides = array<i32>} : memref<1x32x128xf32, #tpu.memory_space<vmem>>, vector<1x8x128xf32>,
    return
  }
  func.func @transform_0(%arg0: i32, %arg1: i32) -> (i32, i32) {
    %c1_i32 = arith.constant 1 : i32
    %0 = arith.muli %arg0, %c1_i32 : i32
    %1 = arith.addi %0, %arg1 : i32
    %c0_i32 = arith.constant 0 : i32
    %c0_i32_0 = arith.constant 0 : i32
    return %1, %c0_i32 : i32, i32
  }
  func.func @transform_1(%arg0: i32, %arg1: i32) -> (i32, i32) {
    %c1_i32 = arith.constant 1 : i32
    %0 = arith.muli %arg0, %c1_i32 : i32
    %1 = arith.addi %0, %arg1 : i32
    %c0_i32 = arith.constant 0 : i32
    %c0_i32_0 = arith.constant 0 : i32
    return %1, %c0_i32 : i32, i32
  }
  func.func @transform_2(%arg0: i32, %arg1: i32) -> (i32, i32, i32) {
    %c0_i32 = arith.constant 0 : i32
    %c0_i32_0 = arith.constant 0 : i32
    %c0_i32_1 = arith.constant 0 : i32
    return %arg0, %c0_i32, %c0_i32_0 : i32, i32, i32
  }
}

</mosaic_0001>

<bundles_post_ra>
// kernel: tpu_custom_call.1
= control target key start
LH: loop header
LB: loop body
LE: loop exit
PB: predicated region body
PF: predicated region fallthrough
CT: control target
= control target key end

     0   :  { %7 = vsyncpa [#allocation3], 0  ;;  %s303_s0 = inlined_call_operand.hbm [shape: f32[32,128], index: 0, kind: input, shape index: {}]   ;;  %s304_s1 = inlined_call_operand.hbm [shape: f32[32,128], index: 1, kind: input, shape index: {}]   ;;  %s305_s2 = inlined_call_operand.hbm [shape: f32[1,32,128], index: 2, kind: output, shape index: {}]  }
   0x1   :  { %8 = vsyncpa [#allocation6], 0 }
   0x2   :  { %9 = vsyncpa [#allocation4], 0  ;;  %s18_s11 = sshll.u32 %s303_s0, 4  ;;  %s264_s12 = smov [#allocation2]   ;;  %s19_s11 = int_to_ptr.hbm [resolvable:$true] %s18_s11 }
   0x3   :  { %s20_s13 = sshll.u32 %s264_s12, 4  ;;  %s35_s16 = sshll.u32 %s304_s1, 4  ;;  %s21_s13 = int_to_ptr.vmem [resolvable:$true] %s20_s13  ;;  %s36_s16 = int_to_ptr.hbm [resolvable:$true] %s35_s16 }
   0x4   :  { %s265_s17 = smov 128   ;;  %s266_s18 = smov 8  }
   0x5   :  { %26 = dma.hbm_to_vmem [thread:$0]  %s19_s11, 512, %s21_s13, [#allocation3], %s265_s17, %s265_s17, %s266_s18  }
   0x6   :  { %s267_s19 = smov [#allocation5]  }
   0x7   :  { %s37_s20 = sshll.u32 %s267_s19, 4  ;;  %s38_s20 = int_to_ptr.vmem [resolvable:$true] %s37_s20 }
   0x8   :  { %43 = dma.hbm_to_vmem [thread:$0]  %s36_s16, 512, %s38_s20, [#allocation6], %s265_s17, %s265_s17, %s266_s18  }
   0x9   :  { %258 = dma.done.wait [#allocation3], 512  }
   0xa   :  { %259 = vsyncadd [#allocation3], 4294966784 }
   0xb   :  { %260 = dma.done.wait [#allocation6], 512  }
   0xc   :  { %261 = vsyncadd [#allocation6], 4294966784  ;;  %v68_v0 = vld [vmem:[#allocation5] sm:$0xff]  ;;  %v69_v1 = vld [vmem:[#allocation5 + $0x8] sm:$0xff]  ;;  %v268_v4 = vmov 0.0   ;;  %s269_s0 = smov [#allocation7]  }
   0xd   :  { %v70_v2 = vld [vmem:[#allocation5 + $0x10] sm:$0xff]  ;;  %v71_v3 = vld [vmem:[#allocation5 + $0x18] sm:$0xff]  ;;  %vm72_vm0 = vcmp.eq.f32.partialorder %v68_v0, 1.0  ;;  %vm73_vm1 = vcmp.eq.f32.partialorder %v69_v1, 1.0  ;;  %vm84_vm3 = vcmp.eq.f32.partialorder %v68_v0, 0.0  ;;  %v64_v7 = vld [vmem:[#allocation2] sm:$0xff] }
   0xe   :  { %vm74_vm2 = vcmp.eq.f32.partialorder %v70_v2, 1.0  ;;  %vm75_vm4 = vcmp.eq.f32.partialorder %v71_v3, 1.0  ;;  %v164_v5 = vsel %vm72_vm0, 1.0, %v268_v4  ;;  %v165_v6 = vsel %vm73_vm1, 1.0, %v268_v4  ;;  %v65_v9 = vld [vmem:[#allocation2 + $0x8] sm:$0xff]  ;;  %v66_v10 = vld [vmem:[#allocation2 + $0x10] sm:$0xff] }
   0xf   :  { %v113_v8 = vadd.f32 %v165_v6, %v164_v5  ;;  %vm85_vm5 = vcmp.eq.f32.partialorder %v69_v1, 0.0  ;;  %vm86_vm6 = vcmp.eq.f32.partialorder %v70_v2, 0.0  ;;  %v67_v11 = vld [vmem:[#allocation2 + $0x18] sm:$0xff]  ;;  %v166_v12 = vsel %vm74_vm2, 1.0, %v268_v4  ;;  %s148_s1 = sshll.u32 %s269_s0, 4  ;;  %s150_s23 = sshll.u32 %s305_s2, 4  ;;  %s149_s1 = int_to_ptr.vmem [resolvable:$true] %s148_s1  ;;  %s151_s23 = int_to_ptr.hbm [resolvable:$true] %s150_s23 }
  0x10   :  { %v167_v13 = vsel %vm75_vm4, 1.0, %v268_v4  ;;  %v168_v14 = vsel %vm84_vm3, 1.0, %v268_v4  ;;  %v169_v15 = vsel %vm85_vm5, 1.0, %v268_v4  ;;  %vm87_vm7 = vcmp.eq.f32.partialorder %v71_v3, 0.0 }
  0x11   :  { %v114_v16 = vadd.f32 %v166_v12, %v113_v8  ;;  %v119_v17 = vadd.f32 %v169_v15, %v168_v14  ;;  %v96_v18 = vmul.f32 0.5, %v64_v7  ;;  %v170_v19 = vsel %vm86_vm6, 1.0, %v268_v4 }
  0x12   :  { %v97_v20 = vmul.f32 0.5, %v65_v9  ;;  %v98_v21 = vmul.f32 0.5, %v66_v10  ;;  %v99_v22 = vmul.f32 0.5, %v67_v11  ;;  %v171_v25 = vsel %vm87_vm7, 1.0, %v268_v4 }
  0x13   :  { %v115_v23 = vadd.f32 %v167_v13, %v114_v16  ;;  %v120_v24 = vadd.f32 %v170_v19, %v119_v17  ;;  %178 = vtanh.f32 %v96_v18 }
  0x14   :  { %180 = vtanh.f32 %v97_v20 }
  0x15   :  { %v121_v26 = vadd.f32 %v171_v25, %v120_v24  ;;  %182 = vtanh.f32 %v98_v21  ;;  %117 = vst [vmem:[#allocation7] sm:$0xff] %v115_v23 }
  0x16   :  { %184 = vtanh.f32 %v99_v22 }
  0x17   :  { %123 = vst [vmem:[#allocation7 + $0x8] sm:$0xff] %v121_v26 }
  0x19   :  { %v179_v27 = vpop.eup %178 }
  0x1a   :  { %v181_v28 = vpop.eup %180  ;;  %v104_v29 = vmul.f32 0.5, %v179_v27 }
  0x1b   :  { %v183_v30 = vpop.eup %182  ;;  %v105_v31 = vmul.f32 0.5, %v181_v28 }
  0x1c   :  { %v185_v32 = vpop.eup %184  ;;  %v106_v33 = vmul.f32 0.5, %v183_v30  ;;  %v108_v34 = vsub.f32 0.5, %v104_v29 }
  0x1d   :  { %v107_v35 = vmul.f32 0.5, %v185_v32  ;;  %v109_v36 = vsub.f32 0.5, %v105_v31 }
  0x1e   :  { %v110_v37 = vsub.f32 0.5, %v106_v33  ;;  %v125_v38 = vmul.f32 %v164_v5, %v108_v34  ;;  %v135_v39 = vmul.f32 %v168_v14, %v108_v34 }
  0x1f   :  { %v111_v40 = vsub.f32 0.5, %v107_v35  ;;  %v126_v41 = vmul.f32 %v165_v6, %v109_v36  ;;  %v136_v42 = vmul.f32 %v169_v15, %v109_v36 }
  0x20   :  { %v127_v43 = vmul.f32 %v166_v12, %v110_v37  ;;  %v137_v44 = vmul.f32 %v170_v19, %v110_v37 }
  0x21   :  { %v128_v45 = vmul.f32 %v167_v13, %v111_v40  ;;  %v129_v46 = vadd.f32 %v126_v41, %v125_v38  ;;  %v138_v47 = vmul.f32 %v171_v25, %v111_v40  ;;  %v139_v48 = vadd.f32 %v136_v42, %v135_v39 }
  0x23   :  { %v130_v49 = vadd.f32 %v129_v46, %v127_v43  ;;  %v140_v50 = vadd.f32 %v139_v48, %v137_v44 }
  0x25   :  { %v131_v51 = vadd.f32 %v130_v49, %v128_v45  ;;  %v141_v52 = vadd.f32 %v140_v50, %v138_v47 }
  0x27   :  { %133 = vst [vmem:[#allocation7 + $0x10] sm:$0xff] %v131_v51 }
  0x28   :  { %143 = vst [vmem:[#allocation7 + $0x18] sm:$0xff] %v141_v52 }
  0x29   :  { %156 = dma.vmem_to_hbm [thread:$0]  %s149_s1, 512, %s151_s23, [#allocation4], %s265_s17, %s265_s17, %s266_s18  }
  0x2a   :  { %262 = dma.done.wait [#allocation4], 512  }
  0x2b   :  { %263 = vsyncadd [#allocation4], 4294966784 }
  0x2c   :  { %161 = vsyncpa [#allocation3], 1 }
  0x2d   :  { %162 = vsyncpa [#allocation6], 1 }
  0x2e   :  { %163 = vsyncpa [#allocation4], 1 }

</bundles_post_ra>
